<compile_context>
chip_gen: v7x
topology: tpu7x:2x2x1
jax: 0.10.0
libtpu: 0.0.40
codegen_flags: <defaults>
</compile_context>

<pallas_src>
import jax
import jax.numpy as jnp
import numpy as np
from jax.experimental import pallas as pl
from jax.experimental.pallas import tpu as pltpu


def _antidiag(n, dtype):
    """Exact 0/1 anti-diagonal permutation matrix of shape (n, n)."""
    r = jax.lax.broadcasted_iota(jnp.int32, (n, n), 0)
    c = jax.lax.broadcasted_iota(jnp.int32, (n, n), 1)
    return (r + c == n - 1).astype(dtype)


def _flip_kernel(hflags_ref, vflags_ref, rw_ref, rh_ref, x_ref, t_ref, ox_ref, ot_ref):
    """One batch sample per grid step: conditional H/V flip of inputs and targets."""
    b = pl.program_id(0)
    hf = hflags_ref[b]          # int32 scalar from SMEM: 1 -> apply horizontal flip
    vf = vflags_ref[b]          # int32 scalar from SMEM: 1 -> apply vertical flip

    # Common path: plain passthrough copy (no MXU work, no selects).
    ox_ref[...] = x_ref[...]
    ot_ref[...] = t_ref[...]

    C = ox_ref.shape[1]
    Ct = ot_ref.shape[1]

    @pl.when(hf > 0)
    def _hflip():
        rw = rw_ref[...]        # (W, W) anti-diagonal: x @ rw reverses the lane (W) axis
        for c in range(C):
            ox_ref[0, c] = jnp.dot(ox_ref[0, c], rw,
                                   preferred_element_type=jnp.float32).astype(ox_ref.dtype)
        for c in range(Ct):
            ot_ref[0, c] = jnp.dot(ot_ref[0, c], rw,
                                   preferred_element_type=jnp.float32).astype(ot_ref.dtype)

    @pl.when(vf > 0)
    def _vflip():
        rh = rh_ref[...]        # (H, H) anti-diagonal: rh @ x reverses the sublane (H) axis
        for c in range(C):
            ox_ref[0, c] = jnp.dot(rh, ox_ref[0, c],
                                   preferred_element_type=jnp.float32).astype(ox_ref.dtype)
        for c in range(Ct):
            ot_ref[0, c] = jnp.dot(rh, ot_ref[0, c],
                                   preferred_element_type=jnp.float32).astype(ot_ref.dtype)


def apply_flips(inputs, targets, hflags, vflags):
    """Apply per-sample conditional H/V flips to both NCHW tensors in one kernel."""
    B, C, H, W = inputs.shape
    Bt, Ct, Ht, Wt = targets.shape
    assert (B, H, W) == (Bt, Ht, Wt), "inputs/targets must share batch and spatial dims"

    R_W = _antidiag(W, inputs.dtype)   # hoisted constants, DMA'd once
    R_H = _antidiag(H, inputs.dtype)

    out_in, out_tg = pl.pallas_call(
        _flip_kernel,
        out_shape=(jax.ShapeDtypeStruct(inputs.shape, inputs.dtype),
                   jax.ShapeDtypeStruct(targets.shape, targets.dtype)),
        grid_spec=pltpu.PrefetchScalarGridSpec(
            num_scalar_prefetch=2,
            grid=(B,),
            in_specs=[
                pl.BlockSpec((W, W), lambda b, hf, vf: (0, 0)),          # R_W (constant)
                pl.BlockSpec((H, H), lambda b, hf, vf: (0, 0)),          # R_H (constant)
                pl.BlockSpec((1, C, H, W), lambda b, hf, vf: (b, 0, 0, 0)),
                pl.BlockSpec((1, Ct, H, W), lambda b, hf, vf: (b, 0, 0, 0)),
            ],
            out_specs=[
                pl.BlockSpec((1, C, H, W), lambda b, hf, vf: (b, 0, 0, 0)),
                pl.BlockSpec((1, Ct, H, W), lambda b, hf, vf: (b, 0, 0, 0)),
            ],
        ),
        compiler_params=pltpu.CompilerParams(
            dimension_semantics=("parallel",)),
    )(hflags, vflags, R_W, R_H, inputs, targets)
    return out_in, out_tg


def data_augmentation_forward(key, inputs, targets, p_hflip=0.25, p_vflip=0.25):
    """Forward pass of DataAugmentation: sample per-sample flip decisions once
    (as kornia does) and apply the SAME decisions to both inputs and targets."""
    B = inputs.shape[0]
    kh, kv = jax.random.split(key)
    hflags = jax.random.bernoulli(kh, p_hflip, (B,)).astype(jnp.int32)
    vflags = jax.random.bernoulli(kv, p_vflip, (B,)).astype(jnp.int32)
    out_inputs, out_targets = apply_flips(inputs, targets, hflags, vflags)
    return (out_inputs, out_targets), (hflags, vflags)


def _reference(x, hflags, vflags):
    """Plain-JAX reference for verification."""
    hf = hflags.astype(bool)[:, None, None, None]
    vf = vflags.astype(bool)[:, None, None, None]
    x = jnp.where(hf, jnp.flip(x, axis=-1), x)
    x = jnp.where(vf, jnp.flip(x, axis=-2), x)
    return x


if __name__ == "__main__":
    key = jax.random.PRNGKey(0)
    k_in, k_tg, k_aug = jax.random.split(key, 3)

    B, C, H, W = 2, 4, 16, 16
    inputs = jax.random.normal(k_in, (B, C, H, W), dtype=jnp.float32)
    targets = jax.random.normal(k_tg, (B, 1, H, W), dtype=jnp.float32)

    # Full module forward (randomly sampled flip decisions).
    (out_in, out_tg), (hflags, vflags) = data_augmentation_forward(k_aug, inputs, targets)
    out_in = jax.block_until_ready(out_in)
    out_tg = jax.block_until_ready(out_tg)
    np.testing.assert_allclose(np.asarray(out_in),
                               np.asarray(_reference(inputs, hflags, vflags)),
                               rtol=0, atol=0)
    np.testing.assert_allclose(np.asarray(out_tg),
                               np.asarray(_reference(targets, hflags, vflags)),
                               rtol=0, atol=0)

    # Forced flags to exercise every branch (hflip only, both flips, etc.).
    hfix = jnp.array([1, 0], dtype=jnp.int32)
    vfix = jnp.array([1, 1], dtype=jnp.int32)
    fin, ftg = apply_flips(inputs, targets, hfix, vfix)
    fin = jax.block_until_ready(fin)
    ftg = jax.block_until_ready(ftg)
    np.testing.assert_allclose(np.asarray(fin),
                               np.asarray(_reference(inputs, hfix, vfix)),
                               rtol=0, atol=0)
    np.testing.assert_allclose(np.asarray(ftg),
                               np.asarray(_reference(targets, hfix, vfix)),
                               rtol=0, atol=0)

    print("KERNEL_OK")
</pallas_src>

<mosaic_0001>
module attributes {stable_mosaic.version = 11 : i64} {
  func.func @_flip_kernel(%arg0: i32, %arg1: memref<2xi32, #tpu.memory_space<smem>>, %arg2: memref<2xi32, #tpu.memory_space<smem>>, %arg3: memref<16x16xf32, #tpu.memory_space<vmem>>, %arg4: memref<16x16xf32, #tpu.memory_space<vmem>>, %arg5: memref<1x4x16x16xf32, #tpu.memory_space<vmem>>, %arg6: memref<1x1x16x16xf32, #tpu.memory_space<vmem>>, %arg7: memref<1x4x16x16xf32, #tpu.memory_space<vmem>>, %arg8: memref<1x1x16x16xf32, #tpu.memory_space<vmem>>) attributes {dimension_semantics = [#tpu.dimension_semantics<parallel>], iteration_bounds = array<i64: 2>, scalar_prefetch = 2 : i64, scratch_operands = 0 : i64, tpu.core_type = #tpu.core_type<tc>, window_params = [{pipeline_mode = #tpu.pipeline_mode<synchronous>, transform_indices = @transform_0, window_bounds = array<i64: 16, 16>}, {pipeline_mode = #tpu.pipeline_mode<synchronous>, transform_indices = @transform_1, window_bounds = array<i64: 16, 16>}, {transform_indices = @transform_2, window_bounds = array<i64: 1, 4, 16, 16>}, {transform_indices = @transform_3, window_bounds = array<i64: 1, 1, 16, 16>}, {transform_indices = @transform_4, window_bounds = array<i64: 1, 4, 16, 16>}, {transform_indices = @transform_5, window_bounds = array<i64: 1, 1, 16, 16>}]} {
    %0 = arith.index_cast %arg0 : i32 to index
    %1 = memref.load %arg1[%0] : memref<2xi32, #tpu.memory_space<smem>>
    %2 = arith.index_cast %arg0 : i32 to index
    %3 = memref.load %arg2[%2] : memref<2xi32, #tpu.memory_space<smem>>
    %c0 = arith.constant 0 : index
    %c0_0 = arith.constant 0 : index
    %c0_1 = arith.constant 0 : index
    %c0_2 = arith.constant 0 : index
    %4 = vector.load %arg5[%c0, %c0_0, %c0_1, %c0_2] : memref<1x4x16x16xf32, #tpu.memory_space<vmem>>, vector<1x4x16x16xf32>
    %c0_3 = arith.constant 0 : index
    %c0_4 = arith.constant 0 : index
    %c0_5 = arith.constant 0 : index
    %c0_6 = arith.constant 0 : index
    %5 = vector.load %arg7[%c0_3, %c0_4, %c0_5, %c0_6] : memref<1x4x16x16xf32, #tpu.memory_space<vmem>>, vector<1x4x16x16xf32>
    tpu.vector_store %arg7[%c0_3, %c0_4, %c0_5, %c0_6], %4 {strides = array<i32>} : memref<1x4x16x16xf32, #tpu.memory_space<vmem>>, vector<1x4x16x16xf32>,
    %c0_7 = arith.constant 0 : index
    %c0_8 = arith.constant 0 : index
    %c0_9 = arith.constant 0 : index
    %c0_10 = arith.constant 0 : index
    %6 = vector.load %arg6[%c0_7, %c0_8, %c0_9, %c0_10] : memref<1x1x16x16xf32, #tpu.memory_space<vmem>>, vector<1x1x16x16xf32>
    %c0_11 = arith.constant 0 : index
    %c0_12 = arith.constant 0 : index
    %c0_13 = arith.constant 0 : index
    %c0_14 = arith.constant 0 : index
    %7 = vector.load %arg8[%c0_11, %c0_12, %c0_13, %c0_14] : memref<1x1x16x16xf32, #tpu.memory_space<vmem>>, vector<1x1x16x16xf32>
    tpu.vector_store %arg8[%c0_11, %c0_12, %c0_13, %c0_14], %6 {strides = array<i32>} : memref<1x1x16x16xf32, #tpu.memory_space<vmem>>, vector<1x1x16x16xf32>,
    %c0_i32 = arith.constant 0 : i32
    %8 = arith.cmpi sgt, %1, %c0_i32 : i32
    %9 = arith.extui %8 : i1 to i32
    %c0_i32_15 = arith.constant 0 : i32
    %10 = arith.cmpi ne, %9, %c0_i32_15 : i32
    scf.if %10 {
      %c0_18 = arith.constant 0 : index
      %c0_19 = arith.constant 0 : index
      %14 = vector.load %arg3[%c0_18, %c0_19] : memref<16x16xf32, #tpu.memory_space<vmem>>, vector<16x16xf32>
      %c0_20 = arith.constant 0 : index
      %c0_21 = arith.constant 0 : index
      %c0_22 = arith.constant 0 : index
      %c0_23 = arith.constant 0 : index
      %15 = vector.load %arg7[%c0_20, %c0_21, %c0_22, %c0_23] : memref<1x4x16x16xf32, #tpu.memory_space<vmem>>, vector<1x1x16x16xf32>
      %16 = vector.shape_cast %15 : vector<1x1x16x16xf32> to vector<16x16xf32>
      %cst = arith.constant dense<0.000000e+00> : vector<16x16xf32>
      %17 = tpu.matmul %16, %14, %cst {dimension_numbers = #tpu.dot_dimension_numbers<[1], [0], [0], [1], [0, 0, 1, 1], [], []>} : vector<16x16xf32>, vector<16x16xf32>, vector<16x16xf32> -> vector<16x16xf32>
      %c0_24 = arith.constant 0 : index
      %c0_25 = arith.constant 0 : index
      %c0_26 = arith.constant 0 : index
      %c0_27 = arith.constant 0 : index
      %18 = vector.load %arg7[%c0_24, %c0_25, %c0_26, %c0_27] : memref<1x4x16x16xf32, #tpu.memory_space<vmem>>, vector<1x1x16x16xf32>
      %19 = vector.shape_cast %18 : vector<1x1x16x16xf32> to vector<16x16xf32>
      %20 = vector.shape_cast %17 : vector<16x16xf32> to vector<1x1x16x16xf32>
      tpu.vector_store %arg7[%c0_24, %c0_25, %c0_26, %c0_27], %20 {strides = array<i32>} : memref<1x4x16x16xf32, #tpu.memory_space<vmem>>, vector<1x1x16x16xf32>,
      %c0_28 = arith.constant 0 : index
      %c1 = arith.constant 1 : index
      %c0_29 = arith.constant 0 : index
      %c0_30 = arith.constant 0 : index
      %21 = vector.load %arg7[%c0_28, %c1, %c0_29, %c0_30] : memref<1x4x16x16xf32, #tpu.memory_space<vmem>>, vector<1x1x16x16xf32>
      %22 = vector.shape_cast %21 : vector<1x1x16x16xf32> to vector<16x16xf32>
      %cst_31 = arith.constant dense<0.000000e+00> : vector<16x16xf32>
      %23 = tpu.matmul %22, %14, %cst_31 {dimension_numbers = #tpu.dot_dimension_numbers<[1], [0], [0], [1], [0, 0, 1, 1], [], []>} : vector<16x16xf32>, vector<16x16xf32>, vector<16x16xf32> -> vector<16x16xf32>
      %c0_32 = arith.constant 0 : index
      %c1_33 = arith.constant 1 : index
      %c0_34 = arith.constant 0 : index
      %c0_35 = arith.constant 0 : index
      %24 = vector.load %arg7[%c0_32, %c1_33, %c0_34, %c0_35] : memref<1x4x16x16xf32, #tpu.memory_space<vmem>>, vector<1x1x16x16xf32>
      %25 = vector.shape_cast %24 : vector<1x1x16x16xf32> to vector<16x16xf32>
      %26 = vector.shape_cast %23 : vector<16x16xf32> to vector<1x1x16x16xf32>
      tpu.vector_store %arg7[%c0_32, %c1_33, %c0_34, %c0_35], %26 {strides = array<i32>} : memref<1x4x16x16xf32, #tpu.memory_space<vmem>>, vector<1x1x16x16xf32>,
      %c0_36 = arith.constant 0 : index
      %c2 = arith.constant 2 : index
      %c0_37 = arith.constant 0 : index
      %c0_38 = arith.constant 0 : index
      %27 = vector.load %arg7[%c0_36, %c2, %c0_37, %c0_38] : memref<1x4x16x16xf32, #tpu.memory_space<vmem>>, vector<1x1x16x16xf32>
      %28 = vector.shape_cast %27 : vector<1x1x16x16xf32> to vector<16x16xf32>
      %cst_39 = arith.constant dense<0.000000e+00> : vector<16x16xf32>
      %29 = tpu.matmul %28, %14, %cst_39 {dimension_numbers = #tpu.dot_dimension_numbers<[1], [0], [0], [1], [0, 0, 1, 1], [], []>} : vector<16x16xf32>, vector<16x16xf32>, vector<16x16xf32> -> vector<16x16xf32>
      %c0_40 = arith.constant 0 : index
      %c2_41 = arith.constant 2 : index
      %c0_42 = arith.constant 0 : index
      %c0_43 = arith.constant 0 : index
      %30 = vector.load %arg7[%c0_40, %c2_41, %c0_42, %c0_43] : memref<1x4x16x16xf32, #tpu.memory_space<vmem>>, vector<1x1x16x16xf32>
      %31 = vector.shape_cast %30 : vector<1x1x16x16xf32> to vector<16x16xf32>
      %32 = vector.shape_cast %29 : vector<16x16xf32> to vector<1x1x16x16xf32>
      tpu.vector_store %arg7[%c0_40, %c2_41, %c0_42, %c0_43], %32 {strides = array<i32>} : memref<1x4x16x16xf32, #tpu.memory_space<vmem>>, vector<1x1x16x16xf32>,
      %c0_44 = arith.constant 0 : index
      %c3 = arith.constant 3 : index
      %c0_45 = arith.constant 0 : index
      %c0_46 = arith.constant 0 : index
      %33 = vector.load %arg7[%c0_44, %c3, %c0_45, %c0_46] : memref<1x4x16x16xf32, #tpu.memory_space<vmem>>, vector<1x1x16x16xf32>
      %34 = vector.shape_cast %33 : vector<1x1x16x16xf32> to vector<16x16xf32>
      %cst_47 = arith.constant dense<0.000000e+00> : vector<16x16xf32>
      %35 = tpu.matmul %34, %14, %cst_47 {dimension_numbers = #tpu.dot_dimension_numbers<[1], [0], [0], [1], [0, 0, 1, 1], [], []>} : vector<16x16xf32>, vector<16x16xf32>, vector<16x16xf32> -> vector<16x16xf32>
      %c0_48 = arith.constant 0 : index
      %c3_49 = arith.constant 3 : index
      %c0_50 = arith.constant 0 : index
      %c0_51 = arith.constant 0 : index
      %36 = vector.load %arg7[%c0_48, %c3_49, %c0_50, %c0_51] : memref<1x4x16x16xf32, #tpu.memory_space<vmem>>, vector<1x1x16x16xf32>
      %37 = vector.shape_cast %36 : vector<1x1x16x16xf32> to vector<16x16xf32>
      %38 = vector.shape_cast %35 : vector<16x16xf32> to vector<1x1x16x16xf32>
      tpu.vector_store %arg7[%c0_48, %c3_49, %c0_50, %c0_51], %38 {strides = array<i32>} : memref<1x4x16x16xf32, #tpu.memory_space<vmem>>, vector<1x1x16x16xf32>,
      %c0_52 = arith.constant 0 : index
      %c0_53 = arith.constant 0 : index
      %c0_54 = arith.constant 0 : index
      %c0_55 = arith.constant 0 : index
      %39 = vector.load %arg8[%c0_52, %c0_53, %c0_54, %c0_55] : memref<1x1x16x16xf32, #tpu.memory_space<vmem>>, vector<1x1x16x16xf32>
      %40 = vector.shape_cast %39 : vector<1x1x16x16xf32> to vector<16x16xf32>
      %cst_56 = arith.constant dense<0.000000e+00> : vector<16x16xf32>
      %41 = tpu.matmul %40, %14, %cst_56 {dimension_numbers = #tpu.dot_dimension_numbers<[1], [0], [0], [1], [0, 0, 1, 1], [], []>} : vector<16x16xf32>, vector<16x16xf32>, vector<16x16xf32> -> vector<16x16xf32>
      %c0_57 = arith.constant 0 : index
      %c0_58 = arith.constant 0 : index
      %c0_59 = arith.constant 0 : index
      %c0_60 = arith.constant 0 : index
      %42 = vector.load %arg8[%c0_57, %c0_58, %c0_59, %c0_60] : memref<1x1x16x16xf32, #tpu.memory_space<vmem>>, vector<1x1x16x16xf32>
      %43 = vector.shape_cast %42 : vector<1x1x16x16xf32> to vector<16x16xf32>
      %44 = vector.shape_cast %41 : vector<16x16xf32> to vector<1x1x16x16xf32>
      tpu.vector_store %arg8[%c0_57, %c0_58, %c0_59, %c0_60], %44 {strides = array<i32>} : memref<1x1x16x16xf32, #tpu.memory_space<vmem>>, vector<1x1x16x16xf32>,
    } else {
    }
    %c0_i32_16 = arith.constant 0 : i32
    %11 = arith.cmpi sgt, %3, %c0_i32_16 : i32
    %12 = arith.extui %11 : i1 to i32
    %c0_i32_17 = arith.constant 0 : i32
    %13 = arith.cmpi ne, %12, %c0_i32_17 : i32
    scf.if %13 {
      %c0_18 = arith.constant 0 : index
      %c0_19 = arith.constant 0 : index
      %14 = vector.load %arg4[%c0_18, %c0_19] : memref<16x16xf32, #tpu.memory_space<vmem>>, vector<16x16xf32>
      %c0_20 = arith.constant 0 : index
      %c0_21 = arith.constant 0 : index
      %c0_22 = arith.constant 0 : index
      %c0_23 = arith.constant 0 : index
      %15 = vector.load %arg7[%c0_20, %c0_21, %c0_22, %c0_23] : memref<1x4x16x16xf32, #tpu.memory_space<vmem>>, vector<1x1x16x16xf32>
      %16 = vector.shape_cast %15 : vector<1x1x16x16xf32> to vector<16x16xf32>
      %cst = arith.constant dense<0.000000e+00> : vector<16x16xf32>
      %17 = tpu.matmul %14, %16, %cst {dimension_numbers = #tpu.dot_dimension_numbers<[1], [0], [0], [1], [0, 0, 1, 1], [], []>} : vector<16x16xf32>, vector<16x16xf32>, vector<16x16xf32> -> vector<16x16xf32>
      %c0_24 = arith.constant 0 : index
      %c0_25 = arith.constant 0 : index
      %c0_26 = arith.constant 0 : index
      %c0_27 = arith.constant 0 : index
      %18 = vector.load %arg7[%c0_24, %c0_25, %c0_26, %c0_27] : memref<1x4x16x16xf32, #tpu.memory_space<vmem>>, vector<1x1x16x16xf32>
      %19 = vector.shape_cast %18 : vector<1x1x16x16xf32> to vector<16x16xf32>
      %20 = vector.shape_cast %17 : vector<16x16xf32> to vector<1x1x16x16xf32>
      tpu.vector_store %arg7[%c0_24, %c0_25, %c0_26, %c0_27], %20 {strides = array<i32>} : memref<1x4x16x16xf32, #tpu.memory_space<vmem>>, vector<1x1x16x16xf32>,
      %c0_28 = arith.constant 0 : index
      %c1 = arith.constant 1 : index
      %c0_29 = arith.constant 0 : index
      %c0_30 = arith.constant 0 : index
      %21 = vector.load %arg7[%c0_28, %c1, %c0_29, %c0_30] : memref<1x4x16x16xf32, #tpu.memory_space<vmem>>, vector<1x1x16x16xf32>
      %22 = vector.shape_cast %21 : vector<1x1x16x16xf32> to vector<16x16xf32>
      %cst_31 = arith.constant dense<0.000000e+00> : vector<16x16xf32>
      %23 = tpu.matmul %14, %22, %cst_31 {dimension_numbers = #tpu.dot_dimension_numbers<[1], [0], [0], [1], [0, 0, 1, 1], [], []>} : vector<16x16xf32>, vector<16x16xf32>, vector<16x16xf32> -> vector<16x16xf32>
      %c0_32 = arith.constant 0 : index
      %c1_33 = arith.constant 1 : index
      %c0_34 = arith.constant 0 : index
      %c0_35 = arith.constant 0 : index
      %24 = vector.load %arg7[%c0_32, %c1_33, %c0_34, %c0_35] : memref<1x4x16x16xf32, #tpu.memory_space<vmem>>, vector<1x1x16x16xf32>
      %25 = vector.shape_cast %24 : vector<1x1x16x16xf32> to vector<16x16xf32>
      %26 = vector.shape_cast %23 : vector<16x16xf32> to vector<1x1x16x16xf32>
      tpu.vector_store %arg7[%c0_32, %c1_33, %c0_34, %c0_35], %26 {strides = array<i32>} : memref<1x4x16x16xf32, #tpu.memory_space<vmem>>, vector<1x1x16x16xf32>,
      %c0_36 = arith.constant 0 : index
      %c2 = arith.constant 2 : index
      %c0_37 = arith.constant 0 : index
      %c0_38 = arith.constant 0 : index
      %27 = vector.load %arg7[%c0_36, %c2, %c0_37, %c0_38] : memref<1x4x16x16xf32, #tpu.memory_space<vmem>>, vector<1x1x16x16xf32>
      %28 = vector.shape_cast %27 : vector<1x1x16x16xf32> to vector<16x16xf32>
      %cst_39 = arith.constant dense<0.000000e+00> : vector<16x16xf32>
      %29 = tpu.matmul %14, %28, %cst_39 {dimension_numbers = #tpu.dot_dimension_numbers<[1], [0], [0], [1], [0, 0, 1, 1], [], []>} : vector<16x16xf32>, vector<16x16xf32>, vector<16x16xf32> -> vector<16x16xf32>
      %c0_40 = arith.constant 0 : index
      %c2_41 = arith.constant 2 : index
      %c0_42 = arith.constant 0 : index
      %c0_43 = arith.constant 0 : index
      %30 = vector.load %arg7[%c0_40, %c2_41, %c0_42, %c0_43] : memref<1x4x16x16xf32, #tpu.memory_space<vmem>>, vector<1x1x16x16xf32>
      %31 = vector.shape_cast %30 : vector<1x1x16x16xf32> to vector<16x16xf32>
      %32 = vector.shape_cast %29 : vector<16x16xf32> to vector<1x1x16x16xf32>
      tpu.vector_store %arg7[%c0_40, %c2_41, %c0_42, %c0_43], %32 {strides = array<i32>} : memref<1x4x16x16xf32, #tpu.memory_space<vmem>>, vector<1x1x16x16xf32>,
      %c0_44 = arith.constant 0 : index
      %c3 = arith.constant 3 : index
      %c0_45 = arith.constant 0 : index
      %c0_46 = arith.constant 0 : index
      %33 = vector.load %arg7[%c0_44, %c3, %c0_45, %c0_46] : memref<1x4x16x16xf32, #tpu.memory_space<vmem>>, vector<1x1x16x16xf32>
      %34 = vector.shape_cast %33 : vector<1x1x16x16xf32> to vector<16x16xf32>
      %cst_47 = arith.constant dense<0.000000e+00> : vector<16x16xf32>
      %35 = tpu.matmul %14, %34, %cst_47 {dimension_numbers = #tpu.dot_dimension_numbers<[1], [0], [0], [1], [0, 0, 1, 1], [], []>} : vector<16x16xf32>, vector<16x16xf32>, vector<16x16xf32> -> vector<16x16xf32>
      %c0_48 = arith.constant 0 : index
      %c3_49 = arith.constant 3 : index
      %c0_50 = arith.constant 0 : index
      %c0_51 = arith.constant 0 : index
      %36 = vector.load %arg7[%c0_48, %c3_49, %c0_50, %c0_51] : memref<1x4x16x16xf32, #tpu.memory_space<vmem>>, vector<1x1x16x16xf32>
      %37 = vector.shape_cast %36 : vector<1x1x16x16xf32> to vector<16x16xf32>
      %38 = vector.shape_cast %35 : vector<16x16xf32> to vector<1x1x16x16xf32>
      tpu.vector_store %arg7[%c0_48, %c3_49, %c0_50, %c0_51], %38 {strides = array<i32>} : memref<1x4x16x16xf32, #tpu.memory_space<vmem>>, vector<1x1x16x16xf32>,
      %c0_52 = arith.constant 0 : index
      %c0_53 = arith.constant 0 : index
      %c0_54 = arith.constant 0 : index
      %c0_55 = arith.constant 0 : index
      %39 = vector.load %arg8[%c0_52, %c0_53, %c0_54, %c0_55] : memref<1x1x16x16xf32, #tpu.memory_space<vmem>>, vector<1x1x16x16xf32>
      %40 = vector.shape_cast %39 : vector<1x1x16x16xf32> to vector<16x16xf32>
      %cst_56 = arith.constant dense<0.000000e+00> : vector<16x16xf32>
      %41 = tpu.matmul %14, %40, %cst_56 {dimension_numbers = #tpu.dot_dimension_numbers<[1], [0], [0], [1], [0, 0, 1, 1], [], []>} : vector<16x16xf32>, vector<16x16xf32>, vector<16x16xf32> -> vector<16x16xf32>
      %c0_57 = arith.constant 0 : index
      %c0_58 = arith.constant 0 : index
      %c0_59 = arith.constant 0 : index
      %c0_60 = arith.constant 0 : index
      %42 = vector.load %arg8[%c0_57, %c0_58, %c0_59, %c0_60] : memref<1x1x16x16xf32, #tpu.memory_space<vmem>>, vector<1x1x16x16xf32>
      %43 = vector.shape_cast %42 : vector<1x1x16x16xf32> to vector<16x16xf32>
      %44 = vector.shape_cast %41 : vector<16x16xf32> to vector<1x1x16x16xf32>
      tpu.vector_store %arg8[%c0_57, %c0_58, %c0_59, %c0_60], %44 {strides = array<i32>} : memref<1x1x16x16xf32, #tpu.memory_space<vmem>>, vector<1x1x16x16xf32>,
    } else {
    }
    return
  }
  func.func @transform_0(%arg0: i32, %arg1: memref<2xi32, #tpu.memory_space<smem>>, %arg2: memref<2xi32, #tpu.memory_space<smem>>) -> (i32, i32) {
    %c0_i32 = arith.constant 0 : i32
    %c0_i32_0 = arith.constant 0 : i32
    %c0_i32_1 = arith.constant 0 : i32
    return %c0_i32, %c0_i32_0 : i32, i32
  }
  func.func @transform_1(%arg0: i32, %arg1: memref<2xi32, #tpu.memory_space<smem>>, %arg2: memref<2xi32, #tpu.memory_space<smem>>) -> (i32, i32) {
    %c0_i32 = arith.constant 0 : i32
    %c0_i32_0 = arith.constant 0 : i32
    %c0_i32_1 = arith.constant 0 : i32
    return %c0_i32, %c0_i32_0 : i32, i32
  }
  func.func @transform_2(%arg0: i32, %arg1: memref<2xi32, #tpu.memory_space<smem>>, %arg2: memref<2xi32, #tpu.memory_space<smem>>) -> (i32, i32, i32, i32) {
    %c0_i32 = arith.constant 0 : i32
    %c0_i32_0 = arith.constant 0 : i32
    %c0_i32_1 = arith.constant 0 : i32
    %c0_i32_2 = arith.constant 0 : i32
    return %arg0, %c0_i32, %c0_i32_0, %c0_i32_1 : i32, i32, i32, i32
  }
  func.func @transform_3(%arg0: i32, %arg1: memref<2xi32, #tpu.memory_space<smem>>, %arg2: memref<2xi32, #tpu.memory_space<smem>>) -> (i32, i32, i32, i32) {
    %c0_i32 = arith.constant 0 : i32
    %c0_i32_0 = arith.constant 0 : i32
    %c0_i32_1 = arith.constant 0 : i32
    %c0_i32_2 = arith.constant 0 : i32
    return %arg0, %c0_i32, %c0_i32_0, %c0_i32_1 : i32, i32, i32, i32
  }
  func.func @transform_4(%arg0: i32, %arg1: memref<2xi32, #tpu.memory_space<smem>>, %arg2: memref<2xi32, #tpu.memory_space<smem>>) -> (i32, i32, i32, i32) {
    %c0_i32 = arith.constant 0 : i32
    %c0_i32_0 = arith.constant 0 : i32
    %c0_i32_1 = arith.constant 0 : i32
    %c0_i32_2 = arith.constant 0 : i32
    return %arg0, %c0_i32, %c0_i32_0, %c0_i32_1 : i32, i32, i32, i32
  }
  func.func @transform_5(%arg0: i32, %arg1: memref<2xi32, #tpu.memory_space<smem>>, %arg2: memref<2xi32, #tpu.memory_space<smem>>) -> (i32, i32, i32, i32) {
    %c0_i32 = arith.constant 0 : i32
    %c0_i32_0 = arith.constant 0 : i32
    %c0_i32_1 = arith.constant 0 : i32
    %c0_i32_2 = arith.constant 0 : i32
    return %arg0, %c0_i32, %c0_i32_0, %c0_i32_1 : i32, i32, i32, i32
  }
}

</mosaic_0001>

<bundles_post_ra>
// kernel: tpu_custom_call.1
= control target key start
LH: loop header
LB: loop body
LE: loop exit
PB: predicated region body
PF: predicated region fallthrough
CT: control target
= control target key end

     0   :  { %s2427_s0 = inlined_call_operand.hbm [shape: s32[2], index: 0, kind: input, shape index: {}]   ;;  %s2428_s2 = inlined_call_operand.hbm [shape: f32[16,16], index: 2, kind: input, shape index: {}]   ;;  %s2429_s3 = inlined_call_operand.hbm [shape: f32[16,16], index: 3, kind: input, shape index: {}]   ;;  %s2430_s4 = inlined_call_operand.hbm [shape: f32[2,4,16,16], index: 4, kind: input, shape index: {}]   ;;  %s2431_s5 = inlined_call_operand.hbm [shape: f32[2,1,16,16], index: 5, kind: input, shape index: {}]   ;;  %s2432_s6 = inlined_call_operand.hbm [shape: f32[2,4,16,16], index: 6, kind: output, shape index: {0}]   ;;  %s2433_s7 = inlined_call_operand.hbm [shape: f32[2,1,16,16], index: 7, kind: output, shape index: {1}]   ;;  %s2434_s1 = inlined_call_operand.vmem [shape: s32[2], index: 1, kind: input, shape index: {}]  }
   0x1   :  { %2448 = sst [smem:[#allocation23_spill]] %s2428_s2  ;;  %s1683_s26 = scalar_lea.hbm %s2427_s0, 16 }
   0x2   :  { %2449 = sst [smem:[#allocation24_spill]] %s2430_s4  ;;  %p1684_p0 = scmp.ne.s32.totalorder %s2427_s0, %s1683_s26 }
   0x3   :  { %p1687_p1 = scmp.lt.u32.totalorder %s1683_s26, %s2427_s0 }
   0x5   :  { %p1689_p2 = pnand %p1687_p1, %p1684_p0 }
   0x7   :  { %1692 = shalt.err (!%p1689_p2)  }
   0x8   :  { %s1931_s8 = smov [#allocation3]   ;;  %s15_s13 = sshll.u32 %s2434_s1, 4  ;;  %s16_s13 = int_to_ptr.vmem [resolvable:$true] %s15_s13 }
   0x9   :  { %14 = dma.hbm_to_smem %s2427_s0, 16, %s1931_s8, [#allocation2] }
   0xa   :  { %s1693_s14 = scalar_lea.vmem %s16_s13, 16  ;;  %p1698_p4 = scmp.lt.s32.totalorder %s16_s13, %s16_s13 }
   0xb   :  { %p1694_p3 = scmp.ne.s32.totalorder %s16_s13, %s1693_s14  ;;  %p1699_p5 = scmp.lt.s32.totalorder %s1693_s14, %s1693_s14 }
   0xd   :  { %p1700_p6 = por %p1699_p5, %p1698_p4 }
   0xf   :  { %p1701_p7 = pnand %p1700_p6, %p1694_p3 }
  0x11   :  { %1704 = shalt.err (!%p1701_p7)  }
  0x12   :  { %s1932_s15 = smov [#allocation4]  }
  0x13   :  { %18 = dma.vmem_to_smem %s16_s13, 16, %s1932_s15, [#allocation2] }
  0x14   :  { %1893 = dma.done.wait [#allocation2], 32 }
  0x15   :  { %1894 = vsyncadd [#allocation2], 4294967264 }
  0x16   :  { %20 = sfence }
  0x17   :  { %21 = vsyncpa [#allocation6], 0 }
  0x18   :  { %22 = vsyncpa [#allocation9], 0 }
  0x19   :  { %23 = vsyncpa [#allocation7], 0 }
  0x1a   :  { %25 = vsyncpa [#allocation7 + $0x1], 0 }
  0x1b   :  { %26 = vsyncpa [#allocation14], 0 }
  0x1c   :  { %28 = vsyncpa [#allocation14 + $0x1], 0  ;;  %s1998_s0 = smov 0   ;;  %s2000_s1 = smov 0  }
  0x1d   :  { %s2002_s16 = smov 0   ;;  %s2004_s17 = smov 0  }
  0x1e LB: > { %s2019_s18 = sadd.s32 4294967295, %s1929_s17   ;;  %s1374_s19 = sadd.s32 4294967294, %s1929_s17   ;;  %s1929_s17 = sphi %s2004_s17, %s2479_s17   ;;  %s1925_s16 = sphi %s2002_s16, %s2483_s16   ;;  %s1921_s1 = sphi %s2000_s1, %s2482_s1   ;;  %s1917_s0 = sphi %s1998_s0, %s2481_s0  }
  0x1f   : > { %s2023_s20 = sadd.s32 1, %s1929_s17   ;;  %s83_s21 = sadd.s32 1, %s1925_s16 }
  0x20   : > { %2450 = sst [smem:[#allocation21_spill]] %s2023_s20  ;;  %s80_s22 = ssub.s32 %s1929_s17, %s2023_s20 }
  0x21   : > { %p90_p8 = scmp.ne.s32.totalorder %s1925_s16, %s1921_s1  ;;  %p81_p9 = scmp.eq.s32.totalorder %s80_s22, 0 }
  0x22   : > { %p91_p10 = scmp.eq.s32.totalorder %s1929_s17, 0  ;;  %p96_p11 = scmp.ne.s32.totalorder %s1921_s1, %s1917_s0 }
  0x23   : > { %p2435_p12 = scmp.eq.s32.totalorder %s2019_s18, 0  ;;  %p146_p1 = scmp.eq.s32.totalorder %s2019_s18, 1 }
  0x24   : > { %s2035_s23 = scalar_select %p81_p9, %s1925_s16, %s83_s21  }
  0x25   : > { %p2037_p13 = por %p91_p10, %p90_p8  ;;  %p2043_p0 = por %p2435_p12, %p96_p11 }
  0x26   : > { %2451 = sst [smem:[#allocation22_spill]] %s2035_s23  ;;  %p152_p2 = scmp.eq.s32.totalorder %s1374_s19, 1 }
  0x27   : > { %s2452_s24 = scalar_select %p2037_p13, 1, 0 }
  0x28   : > { %s2453_s25 = scalar_select %p2043_p0, 1, 0 }
  0x29   : > { %p1375_p3 = scmp.ge.s32.totalorder %s1929_s17, 1  ;;  %p185_p4 = scmp.lt.s32.totalorder %s1929_s17, 3 }
  0x2a   : > { %p2050_p5 = por %p146_p1, %p90_p8  ;;  %p2054_p6 = por %p152_p2, %p96_p11 }
  0x2b   : > { %p2058_p7 = pnand %p1375_p3, %p185_p4  ;;  %s1933_s29 = smov [#allocation5]  }
  0x2c   : > { %s2454_s26 = scalar_select %p2050_p5, 1, 0 }
  0x2d   : > { %s2455_s27 = scalar_select %p2054_p6, 1, 0 }
  0x2e   : > { %s2456_s28 = scalar_select %p2058_p7, 1, 0 }
  0x2f   : > { %p1616_p9 = pneg %p2058_p7  ;;  %s197_s30 = sshll.u32 %s1933_s29, 4  ;;  %s198_s30 = int_to_ptr.vmem [resolvable:$true] %s197_s30 }
  0x30   : > { %s224_s9 = sand.u32 1, %s1929_s17   ;;  %s2458_s2 = sld [smem:[#allocation23_spill]] }
  0x31   : > { %p2066_p10 = pnand %p1616_p9, %p2435_p12 }
  0x33   : > { %p2442_p2 = pneg %p2066_p10 }
  0x36   : > { %s1705_s12 = scalar_lea.hbm %s2458_s2, 256 }
  0x37   : > { %p1706_p1 = scmp.ne.s32.totalorder %s2458_s2, %s1705_s12  ;;  %p1712_p9 = scmp.lt.u32.totalorder %s1705_s12, %s2458_s2 }
  0x39   : > { %p1708_p3 = pnand %p2442_p2, %p1706_p1 }
  0x3b   : > { %p1709_p4 = pneg %p1708_p3 }
  0x3d   : > { %p1714_p8 = pnand %p1712_p9, %p1709_p4 }
  0x3f   : > { %1717 = shalt.err (!%p1714_p8)
}
  0x40   : > { %s1718_s21 = scalar_lea.vmem %s198_s30, 256  ;;  %p1726_p5 = scmp.lt.s32.totalorder %s198_s30, %s198_s30 }
  0x41   : > { %p1719_p12 = scmp.ne.s32.totalorder %s198_s30, %s1718_s21  ;;  %p1727_p0 = scmp.lt.s32.totalorder %s1718_s21, %s1718_s21 }
  0x43   : > { %p1721_p11 = pnand %p1719_p12, %p2442_p2  ;;  %p1728_p7 = por %p1727_p0, %p1726_p5 }
  0x45   : > { %p1722_p6 = pneg %p1721_p11 }
  0x47   : > { %p1729_p13 = pnand %p1728_p7, %p1722_p6 }
  0x49   : > { %1732 = shalt.err (!%p1729_p13)
}
  0x4a   : > { %s2440_s22 = smov 128   ;;  %s1935_s29 = smov 8  }
  0x4b   : > { %1619 = dma.hbm_to_vmem [thread:$0]  (!%p2066_p10), %s2458_s2, 256, %s198_s30, [#allocation6], %s2440_s22, %s2440_s22, %s1935_s29  }
  0x4c   : > { %p2459_p12 = scmp.ne.s32.totalorder %s2452_s24, 0  ;;  %p2460_p0 = scmp.lt.s32.totalorder %s1929_s17, 2 }
  0x4d   : > { %s2439_s13 = sand.u32 1, %s1925_s16   ;;  %s1446_s15 = sshll.u32 %s1929_s17, 10 }
  0x4e   : > { %p2102_p5 = pnand %p2460_p0, %p2459_p12  ;;  %s1379_s14 = sshll.u32 %s2439_s13, 6 }
  0x4f   : > { %s2462_s4 = sld [smem:[#allocation24_spill]]  ;;  %s228_s24 = scalar_lea.vmem [#allocation10], %s1379_s14 }
  0x50   : > { %s2461_s12 = scalar_select %p2102_p5, 1, 0 }
  0x51   : > { %s235_s30 = sshll.u32 %s228_s24, 4  ;;  %s2117_s10 = scalar_lea.sflag [#allocation6], %s224_s9  ;;  %s2115_s30 = int_to_ptr.vmem [resolvable:$true] %s235_s30 }
  0x52   : > { %p2445_p6 = pneg %p2102_p5 }
  0x55   : > { %s2113_s23 = scalar_lea.hbm %s2462_s4, %s1446_s15  ;;  %s1738_s21 = scalar_lea.hbm %s2462_s4, 2048 }
  0x56   : > { %s1733_s11 = scalar_lea.hbm %s2113_s23, 1024  ;;  %p1739_p11 = scmp.lt.u32.totalorder %s2113_s23, %s2462_s4 }
  0x57   : > { %p1734_p13 = scmp.ne.s32.totalorder %s2113_s23, %s1733_s11  ;;  %p1740_p1 = scmp.lt.u32.totalorder %s1738_s21, %s1733_s11 }
  0x58   : > { %p1742_p4 = scmp.lt.u32.totalorder %s1733_s11, %s2113_s23 }
  0x59   : > { %p1736_p7 = pnand %p2445_p6, %p1734_p13  ;;  %p1741_p3 = por %p1740_p1, %p1739_p11 }
  0x5b   : > { %p1737_p8 = pneg %p1736_p7  ;;  %p1743_p9 = por %p1742_p4, %p1741_p3 }
  0x5d   : > { %p1744_p12 = pnand %p1743_p9, %p1737_p8 }
  0x5f   : > { %1747 = shalt.err (!%p1744_p12)
}
  0x60   : > { %s1748_s9 = scalar_lea.vmem %s2115_s30, 1024  ;;  %s1936_s14 = smov [#allocation10]  }
  0x61   : > { %p1749_p0 = scmp.ne.s32.totalorder %s2115_s30, %s1748_s9  ;;  %s1753_s24 = sshll.u32 %s1936_s14, 4  ;;  %s1754_s24 = int_to_ptr.vmem [resolvable:$false] %s1753_s24 }
  0x62   : > { %s1755_s22 = scalar_lea.vmem %s1754_s24, 2048  ;;  %p1756_p2 = scmp.lt.s32.totalorder %s2115_s30, %s1754_s24 }
  0x63   : > { %p1751_p13 = pnand %p1749_p0, %p2445_p6  ;;  %p1757_p11 = scmp.lt.s32.totalorder %s1755_s22, %s1748_s9 }
  0x65   : > { %p1752_p7 = pneg %p1751_p13  ;;  %p1758_p1 = por %p1757_p11, %p1756_p2 }
  0x67   : > { %p1759_p3 = pnand %p1758_p1, %p1752_p7 }
  0x69   : > { %1762 = shalt.err (!%p1759_p3)
}
  0x6a   : > { %s2463_s13 = smov 128   ;;  %s1937_s11 = smov [#allocation8]  }
  0x6b   : > { %1626 = dma.hbm_to_vmem [thread:$0]  (!%p2102_p5), %s2113_s23, 1024, %s2115_s30, %s2117_s10, %s2463_s13, %s2463_s13, %s1935_s29  }
  0x6c   : > { %s210_s15 = sshll.u32 %s1937_s11, 4  ;;  %s2464_s19 = sand.u32 1, %s1925_s16   ;;  %s211_s15 = int_to_ptr.vmem [resolvable:$true] %s210_s15 }
  0x6d   : > { %s1382_s21 = sshll.u32 %s2464_s19, 4  ;;  %s1763_s24 = scalar_lea.hbm %s2429_s3, 256 }
  0x6e   : > { %p1764_p2 = scmp.ne.s32.totalorder %s2429_s3, %s1763_s24  ;;  %p2465_p8 = pneg %p2066_p10 }
  0x6f   : > { %p1770_p12 = scmp.lt.u32.totalorder %s1763_s24, %s2429_s3 }
  0x70   : > { %p1766_p4 = pnand %p1764_p2, %p2465_p8 }
  0x72   : > { %p1767_p9 = pneg %p1766_p4 }
  0x74   : > { %p1772_p0 = pnand %p1770_p12, %p1767_p9 }
  0x76   : > { %1775 = shalt.err (!%p1772_p0)
}
  0x77   : > { %s1776_s23 = scalar_lea.vmem %s211_s15, 256  ;;  %p2466_p7 = pmov %p2465_p8 }
  0x78   : > { %p1777_p13 = scmp.ne.s32.totalorder %s211_s15, %s1776_s23  ;;  %p1784_p3 = scmp.lt.s32.totalorder %s211_s15, %s211_s15 }
  0x79   : > { %p1785_p6 = scmp.lt.s32.totalorder %s1776_s23, %s1776_s23 }
  0x7a   : > { %p1779_p11 = pnand %p1777_p13, %p2466_p7 }
  0x7b   : > { %p1786_p5 = por %p1785_p6, %p1784_p3 }
  0x7c   : > { %p1780_p1 = pneg %p1779_p11 }
  0x7e   : > { %p1787_p2 = pnand %p1786_p5, %p1780_p1 }
  0x80   : > { %1790 = shalt.err (!%p1787_p2)
}
  0x81   : > { %1622 = dma.hbm_to_vmem [thread:$0]  (!%p2066_p10), %s2429_s3, 256, %s211_s15, [#allocation9], %s2463_s13, %s2463_s13, %s1935_s29  }
  0x82   : > { %s1447_s20 = sshll.u32 %s1929_s17, 8  ;;  %s249_s30 = scalar_lea.vmem [#allocation11], %s1382_s21 }
  0x83   : > { %s256_s11 = sshll.u32 %s249_s30, 4  ;;  %s2177_s14 = scalar_lea.hbm %s2431_s5, %s1447_s20  ;;  %s2179_s11 = int_to_ptr.vmem [resolvable:$true] %s256_s11 }
  0x84   : > { %s1791_s8 = scalar_lea.hbm %s2177_s14, 256  ;;  %p2467_p6 = scmp.ne.s32.totalorder %s2461_s12, 0 }
  0x85   : > { %p1792_p5 = scmp.ne.s32.totalorder %s2177_s14, %s1791_s8  ;;  %s1796_s24 = scalar_lea.hbm %s2431_s5, 512 }
  0x86   : > { %p2468_p8 = pneg %p2467_p6  ;;  %p1797_p9 = scmp.lt.u32.totalorder %s2177_s14, %s2431_s5 }
  0x87   : > { %p1798_p12 = scmp.lt.u32.totalorder %s1796_s24, %s1791_s8  ;;  %p1800_p13 = scmp.lt.u32.totalorder %s1791_s8, %s2177_s14 }
  0x88   : > { %p1794_p4 = pnand %p1792_p5, %p2468_p8 }
  0x89   : > { %p1799_p0 = por %p1798_p12, %p1797_p9 }
  0x8a   : > { %p1795_p10 = pneg %p1794_p4 }
  0x8b   : > { %p1801_p7 = por %p1800_p13, %p1799_p0 }
  0x8d   : > { %p1802_p11 = pnand %p1801_p7, %p1795_p10 }
  0x8f   : > { %1805 = shalt.err (!%p1802_p11)
}
  0x90   : > { %s1806_s2 = scalar_lea.vmem %s2179_s11, 256  ;;  %p2469_p3 = pmov %p2468_p8 }
  0x91   : > { %p1807_p1 = scmp.ne.s32.totalorder %s2179_s11, %s1806_s2  ;;  %s1938_s4 = smov [#allocation11]  }
  0x92   : > { %s1811_s20 = sshll.u32 %s1938_s4, 4  ;;  %s1812_s20 = int_to_ptr.vmem [resolvable:$false] %s1811_s20 }
  0x93   : > { %p1809_p2 = pnand %p1807_p1, %p2469_p3  ;;  %s1813_s30 = scalar_lea.vmem %s1812_s20, 512 }
  0x94   : > { %p1814_p8 = scmp.lt.s32.totalorder %s2179_s11, %s1812_s20  ;;  %p1815_p4 = scmp.lt.s32.totalorder %s1813_s30, %s1806_s2 }
  0x95   : > { %p1810_p5 = pneg %p1809_p2 }
  0x96   : > { %p1816_p9 = por %p1815_p4, %p1814_p8 }
  0x98   : > { %p1817_p12 = pnand %p1816_p9, %p1810_p5 }
  0x9a   : > { %1820 = shalt.err (!%p1817_p12)
}
  0x9b   : > { %1629 = dma.hbm_to_vmem [thread:$0]  (!%p2467_p6), %s2177_s14, 256, %s2179_s11, %s2117_s10, %s2463_s13, %s2463_s13, %s1935_s29  }
  0x9c   : > { %p2470_p10 = scmp.ne.s32.totalorder %s2456_s28, 0 }
  0x9d   : > { %p2471_p0 = scmp.eq.s32.totalorder (!%p2470_p10), %s2019_s18, 0 }
  0x9e   : > { %268 = sbr.rel (%p2470_p10) target bundleno = 691 (0x2b3), region = 36 }
  0xa5   : > { %1896 = dma.done.wait (%p2471_p0), [#allocation6], 256   ;;  %p2472_p13 = pmov %p2471_p0 }
  0xa6   : > { %p2473_p7 = pmov %p2471_p0 }
  0xa7   : > { %1898 = vsyncadd (%p2472_p13), [#allocation6], 4294967040 }
  0xa8   : > { %1900 = dma.done.wait (%p2473_p7), [#allocation9], 256   ;;  %p2474_p11 = pmov %p2471_p0 }
  0xa9   : > { %s278_s12 = sand.u32 1, %s2019_s18   ;;  %s2220_s29 = sand.u32 1, %s1921_s1  }
  0xaa   : > { %1902 = vsyncadd (%p2474_p11), [#allocation9], 4294967040  ;;  %s1388_s28 = sshll.u32 %s2220_s29, 6  ;;  %s279_s10 = scalar_lea.sflag [#allocation6], %s278_s12 }
  0xab   : > { %s282_s13 = scalar_lea.vmem [#allocation10], %s1388_s28  ;;  %p2475_p6 = scmp.ne.s32.totalorder %s2453_s25, 0 }
  0xad   : > { %1904 = dma.done.wait (%p2475_p6), %s279_s10, 1280  }
  0xae   : > { %1906 = vsyncadd (%p2475_p6), %s279_s10, 4294966016  ;;  %s328_s11 = sld [smem:[#allocation3 + %s2019_s18]]  ;;  %s1389_s9 = sshll.u32 %s2220_s29, 4  ;;  %vm338_vm0 = vcmask 130048   ;;  %v330_v0 = vld [vmem:[%s282_s13] sm:$0xff]  ;;  %v331_v1 = vld [vmem:[%s282_s13 + $0x8] sm:$0xff] }
  0xaf   : > { %s2229_s19 = sld [smem:[#allocation4 + %s2019_s18]]  ;;  %v332_v2 = vld [vmem:[%s282_s13 + $0x10] sm:$0xff]  ;;  %s2232_s14 = scalar_lea.vmem [#allocation12], %s1388_s28  ;;  %v333_v3 = vld [vmem:[%s282_s13 + $0x18] sm:$0xff]  ;;  %v334_v4 = vld [vmem:[%s282_s13 + $0x20] sm:$0xff] }
  0xb0   : > { %339 = vst.msk [vmem:[%s2232_s14] sm:$0xff] %vm338_vm0, %v330_v0  ;;  %340 = vst.msk [vmem:[%s2232_s14 + $0x8] sm:$0xff] %vm338_vm0, %v331_v1  ;;  %v335_v5 = vld [vmem:[%s282_s13 + $0x28] sm:$0xff]  ;;  %v336_v6 = vld [vmem:[%s282_s13 + $0x30] sm:$0xff]  ;;  %s291_s25 = scalar_lea.vmem [#allocation11], %s1389_s9  ;;  %s2250_s8 = scalar_lea.vmem [#allocation13], %s1389_s9 }
  0xb1   : > { %341 = vst.msk [vmem:[%s2232_s14 + $0x10] sm:$0xff] %vm338_vm0, %v332_v2  ;;  %342 = vst.msk [vmem:[%s2232_s14 + $0x18] sm:$0xff] %vm338_vm0, %v333_v3  ;;  %v337_v7 = vld [vmem:[%s282_s13 + $0x38] sm:$0xff]  ;;  %v347_v8 = vld [vmem:[%s291_s25] sm:$0xff] }
  0xb2   : > { %343 = vst.msk [vmem:[%s2232_s14 + $0x20] sm:$0xff] %vm338_vm0, %v334_v4  ;;  %344 = vst.msk [vmem:[%s2232_s14 + $0x28] sm:$0xff] %vm338_vm0, %v335_v5  ;;  %v348_v9 = vld [vmem:[%s291_s25 + $0x8] sm:$0xff] }
  0xb3   : > { %345 = vst.msk [vmem:[%s2232_s14 + $0x30] sm:$0xff] %vm338_vm0, %v336_v6  ;;  %346 = vst.msk [vmem:[%s2232_s14 + $0x38] sm:$0xff] %vm338_vm0, %v337_v7 }
  0xb4   : > { %349 = vst.msk [vmem:[%s2250_s8] sm:$0xff] %vm338_vm0, %v347_v8  ;;  %350 = vst.msk [vmem:[%s2250_s8 + $0x8] sm:$0xff] %vm338_vm0, %v348_v9  ;;  %p1392_p1 = scmp.le.s32.totalorder %s328_s11, 0 }
  0xb5   : > { %v355_v10 = vld [vmem:[#allocation5] sm:$0xff] (!%p1392_p1)  ;;  %v356_v11 = vld [vmem:[#allocation5 + $0x8] sm:$0xff] (!%p1392_p1) }
  0xb6   : > { %354 = sbr.rel (%p1392_p1) target bundleno = 411 (0x19b), region = 56  ;;  %v1560_v13 = vpack.c.bf16 (!%p1392_p1), %v356_v11, %v355_v10 }
  0xb7   : > { %v357_v12 = vld [vmem:[%s2232_s14] sm:$0xff] (!%p1392_p1)  ;;  %v358_v15 = vld [vmem:[%s2232_s14 + $0x8] sm:$0xff] (!%p1392_p1) }
  0xb8   : > { %1494 = vmatprep.mubr.msk.f32.mxu0 (!%p1392_p1), %vm338_vm0, %v357_v12  ;;  %v1395_v14 = vld [vmem:[%s2232_s14 + $0x10] sm:$0xff] (!%p1392_p1)  ;;  %1561 = vmatprep.subr.bf16.mxu0 (!%p1392_p1), %v1560_v13  ;;  %v1396_v16 = vld [vmem:[%s2232_s14 + $0x18] sm:$0xff] (!%p1392_p1) }
  0xb9   : > { %1501 = vmatprep.mubr.msk.f32.mxu1 (!%p1392_p1), %vm338_vm0, %v1395_v14  ;;  %1565 = vmatprep.subr.bf16.mxu1 (!%p1392_p1), %v1560_v13  ;;  %v1401_v17 = vld [vmem:[%s2232_s14 + $0x20] sm:$0xff] (!%p1392_p1)  ;;  %v1402_v19 = vld [vmem:[%s2232_s14 + $0x28] sm:$0xff] (!%p1392_p1) }
  0xba   : > { %1563 = vmatpush3.bf16.msra.mxu0 (!%p1392_p1), %v1560_v13  ;;  %1567 = vmatpush3.bf16.msra.mxu1 (!%p1392_p1), %v1560_v13  ;;  %v1407_v18 = vld [vmem:[%s2232_s14 + $0x30] sm:$0xff] (!%p1392_p1)  ;;  %v1408_v21 = vld [vmem:[%s2232_s14 + $0x38] sm:$0xff] (!%p1392_p1) }
  0xbb   : > { %1569 = vmatprep.subr.bf16.mxu0 (!%p1392_p1), %v1560_v13  ;;  %1573 = vmatprep.subr.bf16.mxu1 (!%p1392_p1), %v1560_v13  ;;  %v700_v20 = vld [vmem:[%s2250_s8] sm:$0xff] (!%p1392_p1)  ;;  %v701_v22 = vld [vmem:[%s2250_s8 + $0x8] sm:$0xff] (!%p1392_p1) }
  0xbd   : > { %1495 = vmatmul.mubr.msk.f32.vlgmr.msra.gmra.mrb[0].mxu0 %vm338_vm0, %v358_v15  ;;  %1502 = vmatmul.mubr.msk.f32.vlgmr.msra.gmra.mrb[0].mxu1 %vm338_vm0, %v1396_v16 }
  0xbe   : > { %1571 = vmatpush3.bf16.msra.mxu0 %v1560_v13  ;;  %1508 = vmatprep.mubr.msk.f32.mxu0 %vm338_vm0, %v1401_v17 }
  0xbf   : > { %1577 = vmatprep.subr.bf16.mxu0 %v1560_v13  ;;  %1575 = vmatpush3.bf16.msra.mxu1 %v1560_v13 }
  0xc0   : > { %1515 = vmatprep.mubr.msk.f32.mxu1 %vm338_vm0, %v1407_v18 }
  0xc1   : > { %1509 = vmatmul.mubr.msk.f32.vlgmr.msra.gmra.mrb[2].mxu0 %vm338_vm0, %v1402_v19 }
  0xc2   : > { %1579 = vmatpush3.bf16.msra.mxu0 %v1560_v13  ;;  %1522 = vmatprep.mubr.msk.f32.mxu0 %vm338_vm0, %v700_v20 }
  0xc3   : > { %1516 = vmatmul.mubr.msk.f32.vlgmr.msra.gmra.mrb[2].mxu1 %vm338_vm0, %v1408_v21 }
  0xc5   : > { %1523 = vmatmul.mubr.msk.f32.vlgmr.msra.gmra.mrb[4].mxu0 %vm338_vm0, %v701_v22 }
 0x190   : > { %v1496_v23 = vpop.f32.mrb[0].mxu0  ;;  %v1503_v24 = vpop.f32.mrb[0].mxu1 }
 0x191   : > { %441 = vst.msk [vmem:[%s2232_s14 + $0x8] sm:$0xff] %vm338_vm0, %v1496_v23  ;;  %v431_v25 = vpop.f32.mrb[1].mxu0  ;;  %1400 = vst.msk [vmem:[%s2232_s14 + $0x18] sm:$0xff] %vm338_vm0, %v1503_v24  ;;  %v517_v26 = vpop.f32.mrb[1].mxu1 }
 0x192   : > { %440 = vst.msk [vmem:[%s2232_s14] sm:$0xff] %vm338_vm0, %v431_v25  ;;  %1399 = vst.msk [vmem:[%s2232_s14 + $0x10] sm:$0xff] %vm338_vm0, %v517_v26 }
 0x194   : > { %v1510_v27 = vpop.f32.mrb[2].mxu0 }
 0x195   : > { %1406 = vst.msk [vmem:[%s2232_s14 + $0x28] sm:$0xff] %vm338_vm0, %v1510_v27  ;;  %v603_v28 = vpop.f32.mrb[3].mxu0 }
 0x196   : > { %1405 = vst.msk [vmem:[%s2232_s14 + $0x20] sm:$0xff] %vm338_vm0, %v603_v28  ;;  %v1517_v29 = vpop.f32.mrb[2].mxu1 }
 0x197   : > { %1412 = vst.msk [vmem:[%s2232_s14 + $0x38] sm:$0xff] %vm338_vm0, %v1517_v29  ;;  %v689_v30 = vpop.f32.mrb[3].mxu1 }
 0x198   : > { %v1524_v31 = vpop.f32.mrb[4].mxu0  ;;  %1411 = vst.msk [vmem:[%s2232_s14 + $0x30] sm:$0xff] %vm338_vm0, %v689_v30 }
 0x199   : > { %784 = vst.msk [vmem:[%s2250_s8 + $0x8] sm:$0xff] %vm338_vm0, %v1524_v31  ;;  %v774_v32 = vpop.f32.mrb[5].mxu0 }
 0x19a   : > { %783 = vst.msk [vmem:[%s2250_s8] sm:$0xff] %vm338_vm0, %v774_v32 }
 0x19b PF: > { %p1415_p3 = scmp.le.s32.totalorder %s2229_s19, 0 }
 0x19c   : > { %v791_v33 = vld [vmem:[%s2232_s14] sm:$0xff] (!%p1415_p3)  ;;  %v792_v34 = vld [vmem:[%s2232_s14 + $0x8] sm:$0xff] (!%p1415_p3)  ;;  %v789_v35 = vld [vmem:[#allocation8] sm:$0xff] (!%p1415_p3) }
 0x19d   : > { %788 = sbr.rel (%p1415_p3) target bundleno = 641 (0x281), region = 60  ;;  %v1580_v36 = vpack.c.bf16 (!%p1415_p3), %v792_v34, %v791_v33  ;;  %1529 = vmatprep.mubr.msk.f32.mxu0 (!%p1415_p3), %vm338_vm0, %v789_v35  ;;  %v1418_v37 = vld [vmem:[%s2232_s14 + $0x10] sm:$0xff] (!%p1415_p3)  ;;  %v1419_v38 = vld [vmem:[%s2232_s14 + $0x18] sm:$0xff] (!%p1415_p3)  ;;  %1536 = vmatprep.mubr.msk.f32.mxu1 (!%p1415_p3), %vm338_vm0, %v789_v35  ;;  %v1424_v40 = vld [vmem:[%s2232_s14 + $0x20] sm:$0xff] (!%p1415_p3) }
 0x19e   : > { %v1584_v39 = vpack.c.bf16 (!%p1415_p3), %v1419_v38, %v1418_v37  ;;  %v1425_v41 = vld [vmem:[%s2232_s14 + $0x28] sm:$0xff] (!%p1415_p3)  ;;  %v1431_v44 = vld [vmem:[%s2232_s14 + $0x38] sm:$0xff] (!%p1415_p3) }
 0x19f   : > { %v1430_v42 = vld [vmem:[%s2232_s14 + $0x30] sm:$0xff] (!%p1415_p3)  ;;  %1581 = vmatprep.subr.bf16.mxu0 (!%p1415_p3), %v1580_v36  ;;  %v1588_v43 = vpack.c.bf16 (!%p1415_p3), %v1425_v41, %v1424_v40  ;;  %v790_v47 = vld [vmem:[#allocation8 + $0x8] sm:$0xff] (!%p1415_p3) }
 0x1a0   : > { %v1117_v46 = vld [vmem:[%s2250_s8 + $0x8] sm:$0xff] (!%p1415_p3)  ;;  %1583 = vmatpush3.bf16.msra.mxu0 (!%p1415_p3), %v1580_v36  ;;  %1585 = vmatprep.subr.bf16.mxu1 (!%p1415_p3), %v1584_v39  ;;  %v1592_v48 = vpack.c.bf16 (!%p1415_p3), %v1431_v44, %v1430_v42 }
 0x1a1   : > { %v1116_v45 = vld [vmem:[%s2250_s8] sm:$0xff] (!%p1415_p3)  ;;  %1589 = vmatprep.subr.bf16.mxu0 (!%p1415_p3), %v1588_v43  ;;  %1587 = vmatpush3.bf16.msra.mxu1 (!%p1415_p3), %v1584_v39 }
 0x1a2   : > { %v1596_v49 = vpack.c.bf16 (!%p1415_p3), %v1117_v46, %v1116_v45  ;;  %1593 = vmatprep.subr.bf16.mxu1 (!%p1415_p3), %v1592_v48 }
 0x1a3   : > { %1530 = vmatmul.mubr.msk.f32.vlgmr.msra.gmra.mrb[0].mxu0 (!%p1415_p3), %vm338_vm0, %v790_v47 }
 0x1a4   : > { %1591 = vmatpush3.bf16.msra.mxu0 %v1588_v43  ;;  %1543 = vmatprep.mubr.msk.f32.mxu0 %vm338_vm0, %v789_v35 }
 0x1a5   : > { %1537 = vmatmul.mubr.msk.f32.vlgmr.msra.gmra.mrb[0].mxu1 %vm338_vm0, %v790_v47  ;;  %1597 = vmatprep.subr.bf16.mxu0 %v1596_v49 }
 0x1a6   : > { %1595 = vmatpush3.bf16.msra.mxu1 %v1592_v48  ;;  %1550 = vmatprep.mubr.msk.f32.mxu1 %vm338_vm0, %v789_v35 }
 0x1a7   : > { %1544 = vmatmul.mubr.msk.f32.vlgmr.msra.gmra.mrb[2].mxu0 %vm338_vm0, %v790_v47 }
 0x1a8   : > { %1599 = vmatpush3.bf16.msra.mxu0 %v1596_v49  ;;  %1557 = vmatprep.mubr.msk.f32.mxu0 %vm338_vm0, %v789_v35 }
 0x1a9   : > { %1551 = vmatmul.mubr.msk.f32.vlgmr.msra.gmra.mrb[2].mxu1 %vm338_vm0, %v790_v47 }
 0x1ab   : > { %1558 = vmatmul.mubr.msk.f32.vlgmr.msra.gmra.mrb[4].mxu0 %vm338_vm0, %v790_v47 }
 0x276   : > { %v1531_v50 = vpop.f32.mrb[0].mxu0 }
 0x277   : > { %875 = vst.msk [vmem:[%s2232_s14 + $0x8] sm:$0xff] %vm338_vm0, %v1531_v50  ;;  %v865_v51 = vpop.f32.mrb[1].mxu0 }
 0x278   : > { %874 = vst.msk [vmem:[%s2232_s14] sm:$0xff] %vm338_vm0, %v865_v51  ;;  %v1538_v52 = vpop.f32.mrb[0].mxu1 }
 0x279   : > { %1423 = vst.msk [vmem:[%s2232_s14 + $0x18] sm:$0xff] %vm338_vm0, %v1538_v52  ;;  %v945_v53 = vpop.f32.mrb[1].mxu1 }
 0x27a   : > { %v1545_v54 = vpop.f32.mrb[2].mxu0  ;;  %1422 = vst.msk [vmem:[%s2232_s14 + $0x10] sm:$0xff] %vm338_vm0, %v945_v53 }
 0x27b   : > { %1429 = vst.msk [vmem:[%s2232_s14 + $0x28] sm:$0xff] %vm338_vm0, %v1545_v54  ;;  %v1025_v55 = vpop.f32.mrb[3].mxu0 }
 0x27c   : > { %1428 = vst.msk [vmem:[%s2232_s14 + $0x20] sm:$0xff] %vm338_vm0, %v1025_v55  ;;  %v1552_v56 = vpop.f32.mrb[2].mxu1 }
 0x27d   : > { %1435 = vst.msk [vmem:[%s2232_s14 + $0x38] sm:$0xff] %vm338_vm0, %v1552_v56  ;;  %v1105_v57 = vpop.f32.mrb[3].mxu1 }
 0x27e   : > { %v1559_v58 = vpop.f32.mrb[4].mxu0  ;;  %1434 = vst.msk [vmem:[%s2232_s14 + $0x30] sm:$0xff] %vm338_vm0, %v1105_v57 }
 0x27f   : > { %1194 = vst.msk [vmem:[%s2250_s8 + $0x8] sm:$0xff] %vm338_vm0, %v1559_v58  ;;  %v1184_v59 = vpop.f32.mrb[5].mxu0 }
 0x280   : > { %1193 = vst.msk [vmem:[%s2250_s8] sm:$0xff] %vm338_vm0, %v1184_v59 }
 0x281 PF: > { %s1448_s15 = sshll.u32 %s2019_s18, 10  ;;  %s1214_s23 = sshll.u32 %s2232_s14, 4  ;;  %s2344_s23 = int_to_ptr.vmem [resolvable:$true] %s1214_s23 }
 0x282   : > { %s2341_s22 = scalar_lea.hbm %s2432_s6, %s1448_s15  ;;  %s1196_s2 = scalar_lea.sflag [#allocation7], %s2220_s29 }
 0x283   : > { %s1821_s4 = scalar_lea.vmem %s2344_s23, 1024  ;;  %p2476_p5 = scmp.ne.s32.totalorder %s2454_s26, 0 }
 0x284   : > { %p1822_p2 = scmp.ne.s32.totalorder %s2344_s23, %s1821_s4  ;;  %s1939_s20 = smov [#allocation12]  }
 0x285   : > { %s1825_s30 = sshll.u32 %s1939_s20, 4  ;;  %s1826_s30 = int_to_ptr.vmem [resolvable:$false] %s1825_s30 }
 0x286   : > { %p1823_p8 = pnand %p1822_p2, %p2476_p5  ;;  %s1827_s12 = scalar_lea.vmem %s1826_s30, 2048 }
 0x287   : > { %p1828_p9 = scmp.lt.s32.totalorder %s2344_s23, %s1826_s30  ;;  %p1829_p12 = scmp.lt.s32.totalorder %s1827_s12, %s1821_s4 }
 0x288   : > { %p1824_p4 = pneg %p1823_p8 }
 0x289   : > { %p1830_p10 = por %p1829_p12, %p1828_p9 }
 0x28b   : > { %p1831_p0 = pnand %p1830_p10, %p1824_p4 }
 0x28d   : > { %1834 = shalt.err (!%p1831_p0)
}
 0x28e   : > { %s1835_s28 = scalar_lea.hbm %s2341_s22, 1024  ;;  %s1839_s11 = scalar_lea.hbm %s2432_s6, 2048 }
 0x28f   : > { %p1836_p13 = scmp.ne.s32.totalorder %s2341_s22, %s1835_s28  ;;  %p1840_p6 = scmp.lt.u32.totalorder %s2341_s22, %s2432_s6 }
 0x290   : > { %p1841_p1 = scmp.lt.u32.totalorder %s1839_s11, %s1835_s28  ;;  %p1843_p2 = scmp.lt.u32.totalorder %s1835_s28, %s2341_s22 }
 0x291   : > { %p1837_p7 = pnand %p1836_p13, %p2476_p5 }
 0x292   : > { %p1842_p3 = por %p1841_p1, %p1840_p6 }
 0x293   : > { %p1838_p11 = pneg %p1837_p7 }
 0x294   : > { %p1844_p8 = por %p1843_p2, %p1842_p3 }
 0x296   : > { %p1845_p4 = pnand %p1844_p8, %p1838_p11 }
 0x298   : > { %1848 = shalt.err (!%p1845_p4)
}
 0x299   : > { %s1940_s14 = smov 128   ;;  %s1941_s25 = smov 8  }
 0x29a   : > { %1612 = dma.vmem_to_hbm [thread:$0]  (%p2476_p5), %s2344_s23, 1024, %s2341_s22, %s1196_s2, %s1940_s14, %s1940_s14, %s1941_s25  }
 0x29b   : > { %s1449_s15 = sshll.u32 %s2019_s18, 8  ;;  %s1230_s21 = sshll.u32 %s2250_s8, 4  ;;  %s2380_s21 = int_to_ptr.vmem [resolvable:$true] %s1230_s21 }
 0x29c   : > { %s2378_s20 = scalar_lea.hbm %s2433_s7, %s1449_s15  ;;  %s1201_s30 = scalar_lea.sflag [#allocation14], %s2220_s29 }
 0x29d   : > { %s1849_s12 = scalar_lea.vmem %s2380_s21, 256  ;;  %s1942_s28 = smov [#allocation13]  }
 0x29e   : > { %p1850_p9 = scmp.ne.s32.totalorder %s2380_s21, %s1849_s12  ;;  %s1853_s22 = sshll.u32 %s1942_s28, 4  ;;  %s1854_s22 = int_to_ptr.vmem [resolvable:$false] %s1853_s22 }
 0x29f   : > { %s1855_s18 = scalar_lea.vmem %s1854_s22, 512  ;;  %p1856_p0 = scmp.lt.s32.totalorder %s2380_s21, %s1854_s22 }
 0x2a0   : > { %p1851_p12 = pnand %p1850_p9, %p2476_p5  ;;  %p1857_p13 = scmp.lt.s32.totalorder %s1855_s18, %s1849_s12 }
 0x2a2   : > { %p1852_p10 = pneg %p1851_p12  ;;  %p1858_p7 = por %p1857_p13, %p1856_p0 }
 0x2a4   : > { %p1859_p11 = pnand %p1858_p7, %p1852_p10 }
 0x2a6   : > { %1862 = shalt.err (!%p1859_p11)
}
 0x2a7   : > { %s1863_s8 = scalar_lea.hbm %s2378_s20, 256  ;;  %s1867_s10 = scalar_lea.hbm %s2433_s7, 512 }
 0x2a8   : > { %p1864_p6 = scmp.ne.s32.totalorder %s2378_s20, %s1863_s8  ;;  %p1868_p2 = scmp.lt.u32.totalorder %s2378_s20, %s2433_s7 }
 0x2a9   : > { %p1869_p8 = scmp.lt.u32.totalorder %s1867_s10, %s1863_s8  ;;  %p1871_p9 = scmp.lt.u32.totalorder %s1863_s8, %s2378_s20 }
 0x2aa   : > { %p1865_p1 = pnand %p1864_p6, %p2476_p5 }
 0x2ab   : > { %p1870_p4 = por %p1869_p8, %p1868_p2 }
 0x2ac   : > { %p1866_p3 = pneg %p1865_p1 }
 0x2ad   : > { %p1872_p12 = por %p1871_p9, %p1870_p4 }
 0x2af   : > { %p1873_p10 = pnand %p1872_p12, %p1866_p3 }
 0x2b1   : > { %1876 = shalt.err (!%p1873_p10)
}
 0x2b2   : > { %1613 = dma.vmem_to_hbm [thread:$0]  (%p2476_p5), %s2380_s21, 256, %s2378_s20, %s1201_s30, %s1940_s14, %s1940_s14, %s1941_s25  }
 0x2b3 PF: > { %s1245_s19 = sand.u32 1, %s1917_s0   ;;  %p2477_p0 = scmp.ne.s32.totalorder %s2455_s27, 0 }
 0x2b4   : > { %p2478_p13 = scmp.ge.s32.totalorder %s1929_s17, 2  ;;  %s1246_s9 = scalar_lea.sflag [#allocation7], %s1245_s19 }
 0x2b6   : > { %p1631_p7 = pnand %p2478_p13, %p2477_p0 }
 0x2b8   : > { %1908 = dma.done.wait (!%p1631_p7), %s1246_s9, 1024  }
 0x2b9   : > { %1910 = vsyncadd (!%p1631_p7), %s1246_s9, 4294966272  ;;  %s1255_s26 = scalar_lea.sflag [#allocation14], %s1245_s19 }
 0x2ba   : > { %1912 = dma.done.wait (!%p1631_p7), %s1255_s26, 256  }
 0x2bb   : > { %1914 = vsyncadd (!%p1631_p7), %s1255_s26, 4294967040  ;;  %s2479_s17 = sld [smem:[#allocation21_spill]]  ;;  %s2480_s29 = sld [smem:[#allocation22_spill]] }
 0x2bc   : > { %s2481_s0 = smov %s1921_s1  ;;  %s2482_s1 = smov %s1925_s16 }
 0x2c1   : > { %p31_p5 = scmp.ge.s32.totalorder %s2479_s17, 4   ;;  %s2483_s16 = smov %s2480_s29 }
 0x2c3   :  { %33 = sbr.rel (!%p31_p5) target bundleno = 30 (0x1e), region = 130 }
 0x2ca   :  { %1260 = vsyncpa [#allocation6], 1 }
 0x2cb   :  { %1262 = vsyncpa [#allocation6 + $0x1], 1 }
 0x2cc   :  { %1263 = vsyncpa [#allocation9], 1 }
 0x2cd   :  { %1264 = vsyncpa [#allocation7], 1 }
 0x2ce   :  { %1266 = vsyncpa [#allocation7 + $0x1], 1 }
 0x2cf   :  { %1267 = vsyncpa [#allocation14], 1 }
 0x2d0   :  { %1269 = vsyncpa [#allocation14 + $0x1], 1 }

</bundles_post_ra>
